<compile_context>
chip_gen: v5e
topology: v5e:2x2
jax: 0.10.0
libtpu: 0.0.40
codegen_flags: <defaults>
</compile_context>

<pallas_src>
import functools

import jax
import jax.numpy as jnp
from jax import lax
from jax.experimental import pallas as pl
from jax.experimental.pallas import tpu as pltpu

THRESH = 0.5
MARGIN = 0.1
SCALE_POS = 2.0
SCALE_NEG = 40.0
SIM_EPS = 1e-8
EPSILON = 1e-5

_BIG = 1e30


def _inv_frob2_kernel(x_ref, out_ref):
    """out = 1 / max(sum(x*x), SIM_EPS), accumulated over row tiles."""
    @pl.when(pl.program_id(0) == 0)
    def _():
        out_ref[...] = jnp.zeros_like(out_ref)

    x = x_ref[...]
    out_ref[...] += jnp.sum(x * x, keepdims=True)          # (1, 1)

    @pl.when(pl.program_id(0) == pl.num_programs(0) - 1)
    def _():
        out_ref[...] = 1.0 / jnp.maximum(out_ref[...], jnp.float32(SIM_EPS))


def _ms_loss_kernel(x_a_ref, x_c_ref, lab_a_ref, lab_c_ref, inv_ref, out_ref,
                    min_pos_ref, max_neg_ref, pos_sum_ref, neg_sum_ref, *,
                    batch):
    i = pl.program_id(0)            # anchor tile
    p = pl.program_id(1)            # 0 = min/max mining pass, 1 = exp-sum pass
    k = pl.program_id(2)            # comparison tile
    nk = pl.num_programs(2)

    tq = x_a_ref.shape[0]
    tk = x_c_ref.shape[0]

    # sim tile (TK, TQ): anchors on the lane axis -> per-anchor state is
    # (1, TQ) lane-dense, reductions are cheap cross-sublane reductions, and
    # the per-anchor-loss store is lane-dense.  Pre-scale the small anchor
    # tile by 1/||X||_F^2 instead of dividing the full (TK, TQ) Gram tile.
    inv_denom = inv_ref[...]                                   # (1, 1)
    xa = (x_a_ref[...] * inv_denom).astype(jnp.bfloat16)       # (TQ, D)
    xc = x_c_ref[...].astype(jnp.bfloat16)                     # (TK, D)
    sim = lax.dot_general(
        xc, xa,
        dimension_numbers=(((1,), (1,)), ((), ())),
        preferred_element_type=jnp.float32,
    )                                                          # (TK, TQ) f32

    lab_a = lab_a_ref[...]                                     # (1, TQ)
    lab_c = lab_c_ref[...]                                     # (TK, 1)
    same = lab_c == lab_a                                      # (TK, TQ)

    # Mask padded comparison rows (global column index >= batch).
    col_ids = lax.broadcasted_iota(jnp.int32, (tk, 1), 0) + k * tk
    col_ok = col_ids < batch                                   # (TK, 1)

    pos_valid = jnp.logical_and(jnp.logical_and(same, col_ok),
                                sim < jnp.float32(1.0 - EPSILON))
    neg_valid = jnp.logical_and(jnp.logical_not(same), col_ok)

    big = jnp.float32(_BIG)

    # ---------------- pass 0: per-anchor min(pos) / max(neg) ----------------
    @pl.when(jnp.logical_and(p == 0, k == 0))
    def _():
        min_pos_ref[...] = jnp.full_like(min_pos_ref, big)
        max_neg_ref[...] = jnp.full_like(max_neg_ref, -big)

    @pl.when(p == 0)
    def _():
        tile_min = jnp.min(jnp.where(pos_valid, sim, big), axis=0, keepdims=True)
        tile_max = jnp.max(jnp.where(neg_valid, sim, -big), axis=0, keepdims=True)
        min_pos_ref[...] = jnp.minimum(min_pos_ref[...], tile_min)
        max_neg_ref[...] = jnp.maximum(max_neg_ref[...], tile_max)

    # ---------------- pass 1: hard-mined exp sums ----------------------------
    @pl.when(jnp.logical_and(p == 1, k == 0))
    def _():
        pos_sum_ref[...] = jnp.zeros_like(pos_sum_ref)
        neg_sum_ref[...] = jnp.zeros_like(neg_sum_ref)

    @pl.when(p == 1)
    def _():
        mp = min_pos_ref[...]                                  # (1, TQ)
        mn = max_neg_ref[...]                                  # (1, TQ)
        # original: neg kept iff sim + margin > min_pos ; pos kept iff
        #           sim - margin < max_neg  (margin folded into thresholds)
        neg_sel = jnp.logical_and(neg_valid, sim > mp - jnp.float32(MARGIN))
        pos_sel = jnp.logical_and(pos_valid, sim < mn + jnp.float32(MARGIN))

        # bf16 exps on the EUP (v6e/v7x), f32 accumulation of the row sums.
        t = (sim - jnp.float32(THRESH)).astype(jnp.bfloat16)
        pos_e = jnp.exp((-SCALE_POS) * t).astype(jnp.float32)
        neg_e = jnp.exp(SCALE_NEG * t).astype(jnp.float32)

        zero = jnp.float32(0.0)
        pos_sum_ref[...] += jnp.sum(jnp.where(pos_sel, pos_e, zero),
                                    axis=0, keepdims=True)
        neg_sum_ref[...] += jnp.sum(jnp.where(neg_sel, neg_e, zero),
                                    axis=0, keepdims=True)

    # ---------------- finalize: lane-dense per-anchor losses ------------------
    @pl.when(jnp.logical_and(p == 1, k == nk - 1))
    def _():
        mp = min_pos_ref[...]
        mn = max_neg_ref[...]
        # Selected-pos nonempty <=> selected-neg nonempty <=> min_pos < max_neg + margin
        # (false too when either raw set was empty, via the +/-big sentinels).
        # TODO(synk): PyTorch raises on min/max of an empty pos/neg set; here such
        # anchors are simply skipped (standard MS-loss convention) — matches the
        # reference whenever it does not error.
        valid = mp < mn + jnp.float32(MARGIN)
        row_ids = lax.broadcasted_iota(jnp.int32, (1, tq), 1) + i * tq
        valid = jnp.logical_and(valid, row_ids < batch)        # drop padded anchors

        pos_loss = (1.0 / SCALE_POS) * jnp.log(1.0 + pos_sum_ref[...])
        neg_loss = (1.0 / SCALE_NEG) * jnp.log(1.0 + neg_sum_ref[...])
        out_ref[...] = jnp.where(valid, pos_loss + neg_loss, jnp.float32(0.0))


def _round_up(v, m):
    return ((v + m - 1) // m) * m


@jax.jit
def multi_similarity_loss(inputs, labels):
    """inputs: (B, D) float embeddings; labels: (B,) int. Returns scalar f32."""
    x = inputs.astype(jnp.float32)
    B, D = x.shape

    TQ = 128                                    # anchor tile (lane axis)
    Dp = _round_up(D, 128)                      # features padded to full lanes
    Bp = _round_up(B, TQ)                       # batch padded to anchor tiles
    # comparison tile: largest of these that divides the padded batch
    TK = next(c for c in (512, 384, 256, 128) if Bp % c == 0)

    x_p = jnp.pad(x, ((0, Bp - B), (0, Dp - D)))
    lab_p = jnp.pad(labels.astype(jnp.int32), (0, Bp - B))
    lab_row = lab_p.reshape(1, Bp)              # anchor labels, lane-major
    lab_col = lab_p.reshape(Bp, 1)              # comparison labels, sublane-major

    # 1 / max(||X||_F^2, eps)   (global Frobenius normalization, as in reference)
    inv_denom = pl.pallas_call(
        _inv_frob2_kernel,
        out_shape=jax.ShapeDtypeStruct((1, 1), jnp.float32),
        grid=(Bp // TQ,),
        in_specs=[pl.BlockSpec((TQ, Dp), lambda i: (i, 0))],
        out_specs=pl.BlockSpec((1, 1), lambda i: (0, 0)),
        compiler_params=pltpu.CompilerParams(
            dimension_semantics=("arbitrary",)),
    )(x_p)

    n_i = Bp // TQ
    n_k = Bp // TK
    kernel = functools.partial(_ms_loss_kernel, batch=B)

    per_anchor = pl.pallas_call(
        kernel,
        out_shape=jax.ShapeDtypeStruct((1, Bp), jnp.float32),
        grid_spec=pltpu.PrefetchScalarGridSpec(
            num_scalar_prefetch=0,
            grid=(n_i, 2, n_k),
            in_specs=[
                pl.BlockSpec((TQ, Dp), lambda i, p, k: (i, 0)),   # anchor rows
                pl.BlockSpec((TK, Dp), lambda i, p, k: (k, 0)),   # comparison rows
                pl.BlockSpec((1, TQ), lambda i, p, k: (0, i)),    # anchor labels
                pl.BlockSpec((TK, 1), lambda i, p, k: (k, 0)),    # comparison labels
                pl.BlockSpec((1, 1), lambda i, p, k: (0, 0)),     # 1 / ||X||_F^2
            ],
            out_specs=pl.BlockSpec((1, TQ), lambda i, p, k: (0, i)),
            scratch_shapes=[pltpu.VMEM((1, TQ), jnp.float32)] * 4,
        ),
        compiler_params=pltpu.CompilerParams(
            dimension_semantics=("parallel", "arbitrary", "arbitrary"),
            vmem_limit_bytes=48 * 1024 * 1024,
        ),
    )(x_p, x_p, lab_row, lab_col, inv_denom)

    # Padded anchors were zeroed in-kernel; mean over the true batch size.
    # (Also returns 0.0 when no anchor is valid, matching the reference.)
    return jnp.sum(per_anchor) / jnp.float32(B)


if __name__ == "__main__":
    key = jax.random.PRNGKey(0)
    k_x, k_l = jax.random.split(key)

    B, D = 8, 32
    x = jax.random.normal(k_x, (B, D), dtype=jnp.float32)
    labels = jax.random.randint(k_l, (B,), 0, 3, dtype=jnp.int32)

    loss = multi_similarity_loss(x, labels)
    jax.block_until_ready(loss)
    print("KERNEL_OK")
</pallas_src>

<mosaic_0001>
module attributes {stable_mosaic.version = 11 : i64} {
  func.func @_inv_frob2_kernel(%arg0: i32, %arg1: memref<128x128xf32, #tpu.memory_space<vmem>>, %arg2: memref<1x1xf32, #tpu.memory_space<vmem>>) attributes {dimension_semantics = [#tpu.dimension_semantics<arbitrary>], iteration_bounds = array<i64: 1>, scalar_prefetch = 0 : i64, scratch_operands = 0 : i64, tpu.core_type = #tpu.core_type<tc>, window_params = [{transform_indices = @transform_0, window_bounds = array<i64: 128, 128>}, {pipeline_mode = #tpu.pipeline_mode<synchronous>, transform_indices = @transform_1, window_bounds = array<i64: 1, 1>}]} {
    %c0_i32 = arith.constant 0 : i32
    %0 = arith.cmpi eq, %arg0, %c0_i32 : i32
    %1 = arith.extui %0 : i1 to i32
    %c0_i32_0 = arith.constant 0 : i32
    %2 = arith.cmpi ne, %1, %c0_i32_0 : i32
    scf.if %2 {
      %cst_8 = arith.constant 0.000000e+00 : f32
      %16 = vector.broadcast %cst_8 : f32 to vector<1x1xf32>
      %c0_9 = arith.constant 0 : index
      %c0_10 = arith.constant 0 : index
      %17 = vector.load %arg2[%c0_9, %c0_10] : memref<1x1xf32, #tpu.memory_space<vmem>>, vector<1x1xf32>
      tpu.vector_store %arg2[%c0_9, %c0_10], %16 {strides = array<i32>} : memref<1x1xf32, #tpu.memory_space<vmem>>, vector<1x1xf32>,
    } else {
    }
    %c0 = arith.constant 0 : index
    %c0_1 = arith.constant 0 : index
    %3 = vector.load %arg1[%c0, %c0_1] : memref<128x128xf32, #tpu.memory_space<vmem>>, vector<128x128xf32>
    %c0_2 = arith.constant 0 : index
    %c0_3 = arith.constant 0 : index
    %4 = vector.load %arg2[%c0_2, %c0_3] : memref<1x1xf32, #tpu.memory_space<vmem>>, vector<1x1xf32>
    %5 = arith.mulf %3, %3 : vector<128x128xf32>
    %6 = vector.shape_cast %5 : vector<128x128xf32> to vector<1x128x128xf32>
    %cst = arith.constant dense<0.000000e+00> : vector<1xf32>
    %7 = vector.multi_reduction <add>, %6, %cst [1, 2] : vector<1x128x128xf32> to vector<1xf32>
    %8 = vector.shape_cast %7 : vector<1xf32> to vector<1x1x1xf32>
    %9 = vector.extract %8[0, 0, 0] : f32 from vector<1x1x1xf32>
    %10 = vector.broadcast %9 : f32 to vector<1x1xf32>
    %11 = arith.addf %4, %10 : vector<1x1xf32>
    %c0_4 = arith.constant 0 : index
    %c0_5 = arith.constant 0 : index
    %12 = vector.load %arg2[%c0_4, %c0_5] : memref<1x1xf32, #tpu.memory_space<vmem>>, vector<1x1xf32>
    tpu.vector_store %arg2[%c0_4, %c0_5], %11 {strides = array<i32>} : memref<1x1xf32, #tpu.memory_space<vmem>>, vector<1x1xf32>,
    %c0_i32_6 = arith.constant 0 : i32
    %13 = arith.cmpi eq, %arg0, %c0_i32_6 : i32
    %14 = arith.extui %13 : i1 to i32
    %c0_i32_7 = arith.constant 0 : i32
    %15 = arith.cmpi ne, %14, %c0_i32_7 : i32
    scf.if %15 {
      %c0_8 = arith.constant 0 : index
      %c0_9 = arith.constant 0 : index
      %16 = vector.load %arg2[%c0_8, %c0_9] : memref<1x1xf32, #tpu.memory_space<vmem>>, vector<1x1xf32>
      %cst_10 = arith.constant 9.99999993E-9 : f32
      %17 = vector.broadcast %cst_10 : f32 to vector<1x1xf32>
      %18 = arith.maximumf %16, %17 : vector<1x1xf32>
      %cst_11 = arith.constant 1.000000e+00 : f32
      %19 = vector.broadcast %cst_11 : f32 to vector<1x1xf32>
      %20 = arith.divf %19, %18 : vector<1x1xf32>
      %c0_12 = arith.constant 0 : index
      %c0_13 = arith.constant 0 : index
      %21 = vector.load %arg2[%c0_12, %c0_13] : memref<1x1xf32, #tpu.memory_space<vmem>>, vector<1x1xf32>
      tpu.vector_store %arg2[%c0_12, %c0_13], %20 {strides = array<i32>} : memref<1x1xf32, #tpu.memory_space<vmem>>, vector<1x1xf32>,
    } else {
    }
    return
  }
  func.func @transform_0(%arg0: i32) -> (i32, i32) {
    %c0_i32 = arith.constant 0 : i32
    %c0_i32_0 = arith.constant 0 : i32
    return %arg0, %c0_i32 : i32, i32
  }
  func.func @transform_1(%arg0: i32) -> (i32, i32) {
    %c0_i32 = arith.constant 0 : i32
    %c0_i32_0 = arith.constant 0 : i32
    %c0_i32_1 = arith.constant 0 : i32
    return %c0_i32, %c0_i32_0 : i32, i32
  }
}

module attributes {stable_mosaic.version = 11 : i64} {
  func.func @_ms_loss_kernel(%arg0: i32, %arg1: i32, %arg2: i32, %arg3: memref<128x128xf32, #tpu.memory_space<vmem>>, %arg4: memref<128x128xf32, #tpu.memory_space<vmem>>, %arg5: memref<1x128xi32, #tpu.memory_space<vmem>>, %arg6: memref<128x1xi32, #tpu.memory_space<vmem>>, %arg7: memref<1x1xf32, #tpu.memory_space<vmem>>, %arg8: memref<1x128xf32, #tpu.memory_space<vmem>>, %arg9: memref<1x128xf32, #tpu.memory_space<vmem>>, %arg10: memref<1x128xf32, #tpu.memory_space<vmem>>, %arg11: memref<1x128xf32, #tpu.memory_space<vmem>>, %arg12: memref<1x128xf32, #tpu.memory_space<vmem>>) attributes {dimension_semantics = [#tpu.dimension_semantics<parallel>, #tpu.dimension_semantics<arbitrary>, #tpu.dimension_semantics<arbitrary>], iteration_bounds = array<i64: 1, 2, 1>, scalar_prefetch = 0 : i64, scratch_operands = 4 : i64, tpu.core_type = #tpu.core_type<tc>, window_params = [{transform_indices = @transform_0, window_bounds = array<i64: 128, 128>}, {transform_indices = @transform_1, window_bounds = array<i64: 128, 128>}, {transform_indices = @transform_2, window_bounds = array<i64: 1, 128>}, {transform_indices = @transform_3, window_bounds = array<i64: 128, 1>}, {pipeline_mode = #tpu.pipeline_mode<synchronous>, transform_indices = @transform_4, window_bounds = array<i64: 1, 1>}, {transform_indices = @transform_5, window_bounds = array<i64: 1, 128>}]} {
    %c0 = arith.constant 0 : index
    %c0_0 = arith.constant 0 : index
    %0 = vector.load %arg7[%c0, %c0_0] : memref<1x1xf32, #tpu.memory_space<vmem>>, vector<1x1xf32>
    %c0_1 = arith.constant 0 : index
    %c0_2 = arith.constant 0 : index
    %1 = vector.load %arg3[%c0_1, %c0_2] : memref<128x128xf32, #tpu.memory_space<vmem>>, vector<128x128xf32>
    %2 = vector.broadcast %0 : vector<1x1xf32> to vector<128x128xf32>
    %3 = arith.mulf %1, %2 : vector<128x128xf32>
    %4 = arith.truncf %3 : vector<128x128xf32> to vector<128x128xbf16>
    %c0_3 = arith.constant 0 : index
    %c0_4 = arith.constant 0 : index
    %5 = vector.load %arg4[%c0_3, %c0_4] : memref<128x128xf32, #tpu.memory_space<vmem>>, vector<128x128xf32>
    %6 = arith.truncf %5 : vector<128x128xf32> to vector<128x128xbf16>
    %cst = arith.constant dense<0.000000e+00> : vector<128x128xf32>
    %7 = tpu.matmul %6, %4, %cst {dimension_numbers = #tpu.dot_dimension_numbers<[1], [1], [0], [0], [0, 0, 1, 0], [], []>} : vector<128x128xbf16>, vector<128x128xbf16>, vector<128x128xf32> -> vector<128x128xf32>
    %c0_5 = arith.constant 0 : index
    %c0_6 = arith.constant 0 : index
    %8 = vector.load %arg5[%c0_5, %c0_6] : memref<1x128xi32, #tpu.memory_space<vmem>>, vector<1x128xi32>
    %c0_7 = arith.constant 0 : index
    %c0_8 = arith.constant 0 : index
    %9 = vector.load %arg6[%c0_7, %c0_8] : memref<128x1xi32, #tpu.memory_space<vmem>>, vector<128x1xi32>
    %10 = vector.broadcast %9 : vector<128x1xi32> to vector<128x128xi32>
    %11 = vector.broadcast %8 : vector<1x128xi32> to vector<128x128xi32>
    %12 = arith.cmpi eq, %10, %11 : vector<128x128xi32>
    %13 = tpu.iota {dimensions = array<i32: 0>} : vector<128x1xi32>
    %c128_i32 = arith.constant 128 : i32
    %14 = arith.muli %arg2, %c128_i32 : i32
    %15 = vector.broadcast %14 : i32 to vector<128x1xi32>
    %16 = arith.addi %13, %15 : vector<128x1xi32>
    %c8_i32 = arith.constant 8 : i32
    %17 = vector.broadcast %c8_i32 : i32 to vector<128x1xi32>
    %18 = arith.cmpi slt, %16, %17 : vector<128x1xi32>
    %19 = vector.broadcast %18 : vector<128x1xi1> to vector<128x128xi1>
    %20 = arith.andi %12, %19 : vector<128x128xi1>
    %cst_9 = arith.constant 0.999989986 : f32
    %21 = vector.broadcast %cst_9 : f32 to vector<128x128xf32>
    %22 = arith.cmpf olt, %7, %21 : vector<128x128xf32>
    %23 = arith.andi %20, %22 : vector<128x128xi1>
    %cst_10 = arith.constant dense<true> : vector<128x128xi1>
    %24 = arith.xori %12, %cst_10 : vector<128x128xi1>
    %25 = vector.broadcast %18 : vector<128x1xi1> to vector<128x128xi1>
    %26 = arith.andi %24, %25 : vector<128x128xi1>
    %c0_i32 = arith.constant 0 : i32
    %27 = arith.cmpi eq, %arg1, %c0_i32 : i32
    %c0_i32_11 = arith.constant 0 : i32
    %28 = arith.cmpi eq, %arg2, %c0_i32_11 : i32
    %29 = arith.andi %27, %28 : i1
    %30 = arith.extui %29 : i1 to i32
    %cst_12 = arith.constant 1.000000e+30 : f32
    %c0_i32_13 = arith.constant 0 : i32
    %31 = arith.cmpi ne, %30, %c0_i32_13 : i32
    scf.if %31 {
      %48 = vector.broadcast %cst_12 : f32 to vector<1x128xf32>
      %c0_24 = arith.constant 0 : index
      %c0_25 = arith.constant 0 : index
      %49 = vector.load %arg9[%c0_24, %c0_25] : memref<1x128xf32, #tpu.memory_space<vmem>>, vector<1x128xf32>
      tpu.vector_store %arg9[%c0_24, %c0_25], %48 {strides = array<i32>} : memref<1x128xf32, #tpu.memory_space<vmem>>, vector<1x128xf32>,
      %cst_26 = arith.constant 0.000000e+00 : f32
      %50 = arith.subf %cst_26, %cst_12 : f32
      %51 = vector.broadcast %50 : f32 to vector<1x128xf32>
      %c0_27 = arith.constant 0 : index
      %c0_28 = arith.constant 0 : index
      %52 = vector.load %arg10[%c0_27, %c0_28] : memref<1x128xf32, #tpu.memory_space<vmem>>, vector<1x128xf32>
      tpu.vector_store %arg10[%c0_27, %c0_28], %51 {strides = array<i32>} : memref<1x128xf32, #tpu.memory_space<vmem>>, vector<1x128xf32>,
    } else {
    }
    %c0_i32_14 = arith.constant 0 : i32
    %32 = arith.cmpi eq, %arg1, %c0_i32_14 : i32
    %33 = arith.extui %32 : i1 to i32
    %cst_15 = arith.constant 1.000000e+30 : f32
    %c0_i32_16 = arith.constant 0 : i32
    %34 = arith.cmpi ne, %33, %c0_i32_16 : i32
    scf.if %34 {
      %48 = vector.broadcast %cst_15 : f32 to vector<128x128xf32>
      %49 = arith.select %23, %7, %48 : vector<128x128xi1>, vector<128x128xf32>
      %cst_24 = arith.constant dense<0x7F800000> : vector<128xf32>
      %50 = vector.multi_reduction <minimumf>, %49, %cst_24 [0] : vector<128x128xf32> to vector<128xf32>
      %51 = vector.shape_cast %50 : vector<128xf32> to vector<1x128xf32>
      %cst_25 = arith.constant 0.000000e+00 : f32
      %52 = arith.subf %cst_25, %cst_15 : f32
      %53 = vector.broadcast %52 : f32 to vector<128x128xf32>
      %54 = arith.select %26, %7, %53 : vector<128x128xi1>, vector<128x128xf32>
      %cst_26 = arith.constant dense<0xFF800000> : vector<128xf32>
      %55 = vector.multi_reduction <maximumf>, %54, %cst_26 [0] : vector<128x128xf32> to vector<128xf32>
      %56 = vector.shape_cast %55 : vector<128xf32> to vector<1x128xf32>
      %c0_27 = arith.constant 0 : index
      %c0_28 = arith.constant 0 : index
      %57 = vector.load %arg9[%c0_27, %c0_28] : memref<1x128xf32, #tpu.memory_space<vmem>>, vector<1x128xf32>
      %58 = arith.minimumf %57, %51 : vector<1x128xf32>
      %c0_29 = arith.constant 0 : index
      %c0_30 = arith.constant 0 : index
      %59 = vector.load %arg9[%c0_29, %c0_30] : memref<1x128xf32, #tpu.memory_space<vmem>>, vector<1x128xf32>
      tpu.vector_store %arg9[%c0_29, %c0_30], %58 {strides = array<i32>} : memref<1x128xf32, #tpu.memory_space<vmem>>, vector<1x128xf32>,
      %c0_31 = arith.constant 0 : index
      %c0_32 = arith.constant 0 : index
      %60 = vector.load %arg10[%c0_31, %c0_32] : memref<1x128xf32, #tpu.memory_space<vmem>>, vector<1x128xf32>
      %61 = arith.maximumf %60, %56 : vector<1x128xf32>
      %c0_33 = arith.constant 0 : index
      %c0_34 = arith.constant 0 : index
      %62 = vector.load %arg10[%c0_33, %c0_34] : memref<1x128xf32, #tpu.memory_space<vmem>>, vector<1x128xf32>
      tpu.vector_store %arg10[%c0_33, %c0_34], %61 {strides = array<i32>} : memref<1x128xf32, #tpu.memory_space<vmem>>, vector<1x128xf32>,
    } else {
    }
    %c1_i32 = arith.constant 1 : i32
    %35 = arith.cmpi eq, %arg1, %c1_i32 : i32
    %c0_i32_17 = arith.constant 0 : i32
    %36 = arith.cmpi eq, %arg2, %c0_i32_17 : i32
    %37 = arith.andi %35, %36 : i1
    %38 = arith.extui %37 : i1 to i32
    %c0_i32_18 = arith.constant 0 : i32
    %39 = arith.cmpi ne, %38, %c0_i32_18 : i32
    scf.if %39 {
      %cst_24 = arith.constant 0.000000e+00 : f32
      %48 = vector.broadcast %cst_24 : f32 to vector<1x128xf32>
      %c0_25 = arith.constant 0 : index
      %c0_26 = arith.constant 0 : index
      %49 = vector.load %arg11[%c0_25, %c0_26] : memref<1x128xf32, #tpu.memory_space<vmem>>, vector<1x128xf32>
      tpu.vector_store %arg11[%c0_25, %c0_26], %48 {strides = array<i32>} : memref<1x128xf32, #tpu.memory_space<vmem>>, vector<1x128xf32>,
      %cst_27 = arith.constant 0.000000e+00 : f32
      %50 = vector.broadcast %cst_27 : f32 to vector<1x128xf32>
      %c0_28 = arith.constant 0 : index
      %c0_29 = arith.constant 0 : index
      %51 = vector.load %arg12[%c0_28, %c0_29] : memref<1x128xf32, #tpu.memory_space<vmem>>, vector<1x128xf32>
      tpu.vector_store %arg12[%c0_28, %c0_29], %50 {strides = array<i32>} : memref<1x128xf32, #tpu.memory_space<vmem>>, vector<1x128xf32>,
    } else {
    }
    %c1_i32_19 = arith.constant 1 : i32
    %40 = arith.cmpi eq, %arg1, %c1_i32_19 : i32
    %41 = arith.extui %40 : i1 to i32
    %c0_i32_20 = arith.constant 0 : i32
    %42 = arith.cmpi ne, %41, %c0_i32_20 : i32
    scf.if %42 {
      %c0_24 = arith.constant 0 : index
      %c0_25 = arith.constant 0 : index
      %48 = vector.load %arg9[%c0_24, %c0_25] : memref<1x128xf32, #tpu.memory_space<vmem>>, vector<1x128xf32>
      %c0_26 = arith.constant 0 : index
      %c0_27 = arith.constant 0 : index
      %49 = vector.load %arg10[%c0_26, %c0_27] : memref<1x128xf32, #tpu.memory_space<vmem>>, vector<1x128xf32>
      %cst_28 = arith.constant 1.000000e-01 : f32
      %50 = vector.broadcast %cst_28 : f32 to vector<1x128xf32>
      %51 = arith.subf %48, %50 : vector<1x128xf32>
      %52 = vector.broadcast %51 : vector<1x128xf32> to vector<128x128xf32>
      %53 = arith.cmpf ogt, %7, %52 : vector<128x128xf32>
      %54 = arith.andi %26, %53 : vector<128x128xi1>
      %cst_29 = arith.constant 1.000000e-01 : f32
      %55 = vector.broadcast %cst_29 : f32 to vector<1x128xf32>
      %56 = arith.addf %49, %55 : vector<1x128xf32>
      %57 = vector.broadcast %56 : vector<1x128xf32> to vector<128x128xf32>
      %58 = arith.cmpf olt, %7, %57 : vector<128x128xf32>
      %59 = arith.andi %23, %58 : vector<128x128xi1>
      %cst_30 = arith.constant 5.000000e-01 : f32
      %60 = vector.broadcast %cst_30 : f32 to vector<128x128xf32>
      %61 = arith.subf %7, %60 : vector<128x128xf32>
      %62 = arith.truncf %61 : vector<128x128xf32> to vector<128x128xbf16>
      %cst_31 = arith.constant -2.000000e+00 : bf16
      %63 = vector.broadcast %cst_31 : bf16 to vector<128x128xbf16>
      %64 = arith.mulf %63, %62 : vector<128x128xbf16>
      %65 = math.exp %64 : vector<128x128xbf16>
      %66 = arith.extf %65 : vector<128x128xbf16> to vector<128x128xf32>
      %cst_32 = arith.constant 4.000000e+01 : bf16
      %67 = vector.broadcast %cst_32 : bf16 to vector<128x128xbf16>
      %68 = arith.mulf %67, %62 : vector<128x128xbf16>
      %69 = math.exp %68 : vector<128x128xbf16>
      %70 = arith.extf %69 : vector<128x128xbf16> to vector<128x128xf32>
      %c0_33 = arith.constant 0 : index
      %c0_34 = arith.constant 0 : index
      %71 = vector.load %arg11[%c0_33, %c0_34] : memref<1x128xf32, #tpu.memory_space<vmem>>, vector<1x128xf32>
      %cst_35 = arith.constant 0.000000e+00 : f32
      %72 = vector.broadcast %cst_35 : f32 to vector<128x128xf32>
      %73 = arith.select %59, %66, %72 : vector<128x128xi1>, vector<128x128xf32>
      %cst_36 = arith.constant dense<0.000000e+00> : vector<128xf32>
      %74 = vector.multi_reduction <add>, %73, %cst_36 [0] : vector<128x128xf32> to vector<128xf32>
      %75 = vector.shape_cast %74 : vector<128xf32> to vector<1x128xf32>
      %76 = arith.addf %71, %75 : vector<1x128xf32>
      %c0_37 = arith.constant 0 : index
      %c0_38 = arith.constant 0 : index
      %77 = vector.load %arg11[%c0_37, %c0_38] : memref<1x128xf32, #tpu.memory_space<vmem>>, vector<1x128xf32>
      tpu.vector_store %arg11[%c0_37, %c0_38], %76 {strides = array<i32>} : memref<1x128xf32, #tpu.memory_space<vmem>>, vector<1x128xf32>,
      %c0_39 = arith.constant 0 : index
      %c0_40 = arith.constant 0 : index
      %78 = vector.load %arg12[%c0_39, %c0_40] : memref<1x128xf32, #tpu.memory_space<vmem>>, vector<1x128xf32>
      %cst_41 = arith.constant 0.000000e+00 : f32
      %79 = vector.broadcast %cst_41 : f32 to vector<128x128xf32>
      %80 = arith.select %54, %70, %79 : vector<128x128xi1>, vector<128x128xf32>
      %cst_42 = arith.constant dense<0.000000e+00> : vector<128xf32>
      %81 = vector.multi_reduction <add>, %80, %cst_42 [0] : vector<128x128xf32> to vector<128xf32>
      %82 = vector.shape_cast %81 : vector<128xf32> to vector<1x128xf32>
      %83 = arith.addf %78, %82 : vector<1x128xf32>
      %c0_43 = arith.constant 0 : index
      %c0_44 = arith.constant 0 : index
      %84 = vector.load %arg12[%c0_43, %c0_44] : memref<1x128xf32, #tpu.memory_space<vmem>>, vector<1x128xf32>
      tpu.vector_store %arg12[%c0_43, %c0_44], %83 {strides = array<i32>} : memref<1x128xf32, #tpu.memory_space<vmem>>, vector<1x128xf32>,
    } else {
    }
    %c1_i32_21 = arith.constant 1 : i32
    %43 = arith.cmpi eq, %arg1, %c1_i32_21 : i32
    %c0_i32_22 = arith.constant 0 : i32
    %44 = arith.cmpi eq, %arg2, %c0_i32_22 : i32
    %45 = arith.andi %43, %44 : i1
    %46 = arith.extui %45 : i1 to i32
    %c0_i32_23 = arith.constant 0 : i32
    %47 = arith.cmpi ne, %46, %c0_i32_23 : i32
    scf.if %47 {
      %c0_24 = arith.constant 0 : index
      %c0_25 = arith.constant 0 : index
      %48 = vector.load %arg9[%c0_24, %c0_25] : memref<1x128xf32, #tpu.memory_space<vmem>>, vector<1x128xf32>
      %c0_26 = arith.constant 0 : index
      %c0_27 = arith.constant 0 : index
      %49 = vector.load %arg10[%c0_26, %c0_27] : memref<1x128xf32, #tpu.memory_space<vmem>>, vector<1x128xf32>
      %cst_28 = arith.constant 1.000000e-01 : f32
      %50 = vector.broadcast %cst_28 : f32 to vector<1x128xf32>
      %51 = arith.addf %49, %50 : vector<1x128xf32>
      %52 = arith.cmpf olt, %48, %51 : vector<1x128xf32>
      %53 = tpu.iota {dimensions = array<i32: 1>} : vector<1x128xi32>
      %c128_i32_29 = arith.constant 128 : i32
      %54 = arith.muli %arg0, %c128_i32_29 : i32
      %55 = vector.broadcast %54 : i32 to vector<1x128xi32>
      %56 = arith.addi %53, %55 : vector<1x128xi32>
      %c8_i32_30 = arith.constant 8 : i32
      %57 = vector.broadcast %c8_i32_30 : i32 to vector<1x128xi32>
      %58 = arith.cmpi slt, %56, %57 : vector<1x128xi32>
      %59 = arith.andi %52, %58 : vector<1x128xi1>
      %c0_31 = arith.constant 0 : index
      %c0_32 = arith.constant 0 : index
      %60 = vector.load %arg11[%c0_31, %c0_32] : memref<1x128xf32, #tpu.memory_space<vmem>>, vector<1x128xf32>
      %cst_33 = arith.constant 1.000000e+00 : f32
      %61 = vector.broadcast %cst_33 : f32 to vector<1x128xf32>
      %62 = arith.addf %61, %60 : vector<1x128xf32>
      %63 = math.log %62 : vector<1x128xf32>
      %cst_34 = arith.constant 5.000000e-01 : f32
      %64 = vector.broadcast %cst_34 : f32 to vector<1x128xf32>
      %65 = arith.mulf %64, %63 : vector<1x128xf32>
      %c0_35 = arith.constant 0 : index
      %c0_36 = arith.constant 0 : index
      %66 = vector.load %arg12[%c0_35, %c0_36] : memref<1x128xf32, #tpu.memory_space<vmem>>, vector<1x128xf32>
      %cst_37 = arith.constant 1.000000e+00 : f32
      %67 = vector.broadcast %cst_37 : f32 to vector<1x128xf32>
      %68 = arith.addf %67, %66 : vector<1x128xf32>
      %69 = math.log %68 : vector<1x128xf32>
      %cst_38 = arith.constant 2.500000e-02 : f32
      %70 = vector.broadcast %cst_38 : f32 to vector<1x128xf32>
      %71 = arith.mulf %70, %69 : vector<1x128xf32>
      %72 = arith.addf %65, %71 : vector<1x128xf32>
      %cst_39 = arith.constant 0.000000e+00 : f32
      %73 = vector.broadcast %cst_39 : f32 to vector<1x128xf32>
      %74 = arith.select %59, %72, %73 : vector<1x128xi1>, vector<1x128xf32>
      %c0_40 = arith.constant 0 : index
      %c0_41 = arith.constant 0 : index
      %75 = vector.load %arg8[%c0_40, %c0_41] : memref<1x128xf32, #tpu.memory_space<vmem>>, vector<1x128xf32>
      tpu.vector_store %arg8[%c0_40, %c0_41], %74 {strides = array<i32>} : memref<1x128xf32, #tpu.memory_space<vmem>>, vector<1x128xf32>,
    } else {
    }
    return
  }
  func.func @transform_0(%arg0: i32, %arg1: i32, %arg2: i32) -> (i32, i32) {
    %c0_i32 = arith.constant 0 : i32
    %c0_i32_0 = arith.constant 0 : i32
    return %arg0, %c0_i32 : i32, i32
  }
  func.func @transform_1(%arg0: i32, %arg1: i32, %arg2: i32) -> (i32, i32) {
    %c0_i32 = arith.constant 0 : i32
    %c0_i32_0 = arith.constant 0 : i32
    return %arg2, %c0_i32 : i32, i32
  }
  func.func @transform_2(%arg0: i32, %arg1: i32, %arg2: i32) -> (i32, i32) {
    %c0_i32 = arith.constant 0 : i32
    %c0_i32_0 = arith.constant 0 : i32
    return %c0_i32, %arg0 : i32, i32
  }
  func.func @transform_3(%arg0: i32, %arg1: i32, %arg2: i32) -> (i32, i32) {
    %c0_i32 = arith.constant 0 : i32
    %c0_i32_0 = arith.constant 0 : i32
    return %arg2, %c0_i32 : i32, i32
  }
  func.func @transform_4(%arg0: i32, %arg1: i32, %arg2: i32) -> (i32, i32) {
    %c0_i32 = arith.constant 0 : i32
    %c0_i32_0 = arith.constant 0 : i32
    %c0_i32_1 = arith.constant 0 : i32
    return %c0_i32, %c0_i32_0 : i32, i32
  }
  func.func @transform_5(%arg0: i32, %arg1: i32, %arg2: i32) -> (i32, i32) {
    %c0_i32 = arith.constant 0 : i32
    %c0_i32_0 = arith.constant 0 : i32
    return %c0_i32, %arg0 : i32, i32
  }
}

</mosaic_0001>

<bundles_post_ra>
// kernel: multi_similarity_loss.2
= control target key start
LH: loop header
LB: loop body
LE: loop exit
PB: predicated region body
PF: predicated region fallthrough
CT: control target
= control target key end

     0   :  { %s211_s0 = inlined_call_operand.vmem [shape: f32[128,128], index: 0, kind: input, shape index: {}]   ;;  %s212_s1 = inlined_call_operand.hbm [shape: f32[1,1], index: 1, kind: output, shape index: {}]  }
   0x1   :  { %v15_v0 = vld [vmem:[%s211_s0] sm:$0xff]  ;;  %v16_v1 = vld [vmem:[%s211_s0 + $0x8] sm:$0xff]  ;;  %v17_v2 = vld [vmem:[%s211_s0 + $0x10] sm:$0xff] }
   0x2   :  { %v18_v3 = vld [vmem:[%s211_s0 + $0x18] sm:$0xff]  ;;  %v32_v4 = vmul.f32 %v15_v0, %v15_v0  ;;  %v33_v5 = vmul.f32 %v16_v1, %v16_v1  ;;  %v34_v6 = vmul.f32 %v17_v2, %v17_v2  ;;  %v19_v7 = vld [vmem:[%s211_s0 + $0x20] sm:$0xff]  ;;  %v20_v10 = vld [vmem:[%s211_s0 + $0x28] sm:$0xff] }
   0x3   :  { %v35_v8 = vmul.f32 %v18_v3, %v18_v3  ;;  %v36_v11 = vmul.f32 %v19_v7, %v19_v7 }
   0x4   :  { %v48_v9 = vadd.f32 %v33_v5, %v32_v4 }
   0x6   :  { %v49_v12 = vadd.f32 %v48_v9, %v34_v6 }
   0x7   :  { %6 = vsyncpa [#allocation3], 0  ;;  %v21_v13 = vld [vmem:[%s211_s0 + $0x30] sm:$0xff]  ;;  %v37_v14 = vmul.f32 %v20_v10, %v20_v10  ;;  %v22_v16 = vld [vmem:[%s211_s0 + $0x38] sm:$0xff]  ;;  %vm13_vm0 = vcmask 0   ;;  %v145_v47 = vmov 0.0  }
   0x8   :  { %v50_v15 = vadd.f32 %v49_v12, %v35_v8  ;;  %v38_v17 = vmul.f32 %v21_v13, %v21_v13  ;;  %v23_v19 = vld [vmem:[%s211_s0 + $0x40] sm:$0xff]  ;;  %v39_v20 = vmul.f32 %v22_v16, %v22_v16  ;;  %v24_v22 = vld [vmem:[%s211_s0 + $0x48] sm:$0xff]  ;;  %v25_v25 = vld [vmem:[%s211_s0 + $0x50] sm:$0xff]  ;;  %14 = vst.msk [vmem:[#allocation2] sm:$0x1] %vm13_vm0, %v145_v47  ;;  %s146_s9 = smov [#allocation2]  }
   0x9   :  { %v40_v23 = vmul.f32 %v23_v19, %v23_v19  ;;  %v41_v26 = vmul.f32 %v24_v22, %v24_v22  ;;  %v26_v28 = vld [vmem:[%s211_s0 + $0x58] sm:$0xff]  ;;  %v42_v29 = vmul.f32 %v25_v25, %v25_v25  ;;  %v27_v31 = vld [vmem:[%s211_s0 + $0x60] sm:$0xff]  ;;  %v28_v34 = vld [vmem:[%s211_s0 + $0x68] sm:$0xff]  ;;  %s102_s10 = sshll.u32 %s146_s9, 4  ;;  %s104_s13 = sshll.u32 %s212_s1, 4  ;;  %s103_s10 = int_to_ptr.vmem [resolvable:$true] %s102_s10  ;;  %s105_s13 = int_to_ptr.hbm [resolvable:$true] %s104_s13 }
   0xa   :  { %v51_v18 = vadd.f32 %v50_v15, %v36_v11  ;;  %v43_v32 = vmul.f32 %v26_v28, %v26_v28  ;;  %v44_v35 = vmul.f32 %v27_v31, %v27_v31  ;;  %v29_v37 = vld [vmem:[%s211_s0 + $0x70] sm:$0xff]  ;;  %v45_v38 = vmul.f32 %v28_v34, %v28_v34  ;;  %v30_v40 = vld [vmem:[%s211_s0 + $0x78] sm:$0xff] }
   0xb   :  { %v46_v41 = vmul.f32 %v29_v37, %v29_v37  ;;  %v47_v43 = vmul.f32 %v30_v40, %v30_v40 }
   0xc   :  { %v52_v21 = vadd.f32 %v51_v18, %v37_v14 }
   0xe   :  { %v53_v24 = vadd.f32 %v52_v21, %v38_v17 }
   0xf   :  { %v31_v55 = vld [vmem:[#allocation2] sm:$0x1] }
  0x10   :  { %v54_v27 = vadd.f32 %v53_v24, %v39_v20 }
  0x12   :  { %v55_v30 = vadd.f32 %v54_v27, %v40_v23 }
  0x14   :  { %v56_v33 = vadd.f32 %v55_v30, %v41_v26 }
  0x16   :  { %v57_v36 = vadd.f32 %v56_v33, %v42_v29 }
  0x18   :  { %v58_v39 = vadd.f32 %v57_v36, %v43_v32 }
  0x1a   :  { %v59_v42 = vadd.f32 %v58_v39, %v44_v35 }
  0x1c   :  { %v60_v44 = vadd.f32 %v59_v42, %v45_v38 }
  0x1e   :  { %v61_v45 = vadd.f32 %v60_v44, %v46_v41 }
  0x20   :  { %v62_v46 = vadd.f32 %v61_v45, %v47_v43 }
  0x22   :  { %63 = vadd.xlane.f32.xlu0 %v62_v46 }
  0x95   :  { %v64_v48 = vpop.xlane.xlu0 %63 }
  0x96   :  { %v65_v49 = vrot.slane %v64_v48, 4 }
  0x98   :  { %v66_v50 = vadd.f32 %v65_v49, %v64_v48 }
  0x9a   :  { %v67_v51 = vrot.slane %v66_v50, 2 }
  0x9c   :  { %v68_v52 = vadd.f32 %v67_v51, %v66_v50 }
  0x9e   :  { %v69_v53 = vrot.slane %v68_v52, 1 }
  0xa0   :  { %v70_v54 = vadd.f32 %v69_v53, %v68_v52 }
  0xa2   :  { %113 = vpush %v70_v54 }
  0xd3   :  { %s114_s0 = spop %113 }
  0xd4   :  { %v72_v56 = vstv %s114_s0 }
  0xd5   :  { %v73_v57 = vadd.f32 %v72_v56, %v31_v55 }
  0xd7   :  { %75 = vst.msk [vmem:[#allocation2] sm:$0x1] %vm13_vm0, %v73_v57 }
  0xde   :  { %v79_v58 = vld [vmem:[#allocation2] sm:$0x1] }
  0xdf   :  { %v80_v59 = vmax.f32 %v79_v58, 1e-08 }
  0xe1   :  { %117 = vrcp.f32 %v80_v59  ;;  %v92_v63 = vand.u32 2147483648, %v80_v59  ;;  %v90_v1 = vand.u32 2147483647, %v80_v59  ;;  %vm86_vm2 = vweird.f32 %v80_v59 }
  0xe3   :  { %v93_v3 = vor.u32 1.1754944e-38, %v92_v63  ;;  %vm91_vm4 = vcmp.eq.f32.partialorder %v90_v1, 8.507059e+37 }
  0xe7   :  { %v118_v60 = vpop.eup %117 }
  0xe8   :  { %v82_v61 = vmul.f32 %v118_v60, %v80_v59  ;;  %vm87_vm1 = vweird.f32 %v118_v60 }
  0xe9   :  { %vm88_vm3 = vmor %vm86_vm2, %vm87_vm1 }
  0xea   :  { %v83_v62 = vsub.f32 1.0, %v82_v61 }
  0xec   :  { %v84_v0 = vmul.f32 %v118_v60, %v83_v62 }
  0xee   :  { %v85_v2 = vadd.f32 %v118_v60, %v84_v0 }
  0xf0   :  { %v89_v4 = vsel %vm88_vm3, %v118_v60, %v85_v2 }
  0xf1   :  { %v94_v5 = vsel %vm91_vm4, %v93_v3, %v89_v4 }
  0xf2   :  { %96 = vst.msk [vmem:[#allocation2] sm:$0x1] %vm13_vm0, %v94_v5 }
  0xf3   :  { %107 = dma.vmem_to_hbm [thread:$0]  %s103_s10, 16, %s105_s13, [#allocation3]  }
  0xf4   :  { %143 = dma.done.wait [#allocation3], 16  }
  0xf5   :  { %144 = vsyncadd [#allocation3], 4294967280 }
  0xf6   :  { %112 = vsyncpa [#allocation3], 1 }

// kernel: multi_similarity_loss.3
= control target key start
LH: loop header
LB: loop body
LE: loop exit
PB: predicated region body
PF: predicated region fallthrough
CT: control target
= control target key end

     0   :  { %s1480_s20 = smov 0   ;;  %s1482_s21 = smov 0   ;;  %s1678_s0 = inlined_call_operand.vmem [shape: f32[128,128], index: 0, kind: input, shape index: {}, may-alias: {0,1}]   ;;  %s1679_s1 = inlined_call_operand.vmem [shape: f32[128,128], index: 1, kind: input, shape index: {}, may-alias: {0,1}]   ;;  %s1680_s2 = inlined_call_operand.vmem [shape: s32[1,128], index: 2, kind: input, shape index: {}]   ;;  %s1681_s3 = inlined_call_operand.vmem [shape: s32[128,1], index: 3, kind: input, shape index: {}]   ;;  %s1682_s4 = inlined_call_operand.<no memory space> [shape: f32[1,1], index: 4, kind: input, shape index: {}]   ;;  %s1683_s5 = inlined_call_operand.vmem [shape: f32[1,128], index: 5, kind: output, shape index: {}]  }
   0x1   :  { %v10_v0 = vstv %s1682_s4  ;;  %s1484_s22 = smov 0  }
   0x2   :  { %11 = vst [vmem:[#allocation6] sm:$0x1] %v10_v0 }
   0x3 LB: > { %s32_s4 = sadd.s32 1, %s1436_s21  ;;  %p1327_p0 = scmp.ge.s32.totalorder %s1440_s22, 1  ;;  %s1440_s22 = sphi %s1484_s22, %s17_s22   ;;  %s1436_s21 = sphi %s1482_s21, %s1689_s21   ;;  %s1432_s20 = sphi %s1480_s20, %s1688_s20  }
   0x4   : > { %p34_p1 = scmp.ge.s32.totalorder %s32_s4, 2  ;;  %p239_p2 = scmp.lt.s32.totalorder %s1440_s22, 3 }
   0x6   : > { %s1691_s4 = smov (%p34_p1, %s32_s4), 0  ;;  %p240_p3 = pnand %p1327_p0, %p239_p2 }
   0x7   : > { %p667_p4 = scmp.eq.s32.totalorder (!%p240_p3), %s1432_s20, 0 }
   0x8   : > { %243 = sbr.rel (%p240_p3) target bundleno = 468 (0x1d4), region = 40 }
   0xd   : > { %v1408_v1 = vld [vmem:[#allocation6] ss:$0 sm:$0xff]  ;;  %v1442_v2 = vmov 0   ;;  %v317_v4 = vld [vmem:[%s1678_s0 + $0x70] sm:$0xff]  ;;  %v318_v5 = vld [vmem:[%s1678_s0 + $0x78] sm:$0xff]  ;;  %vm1443_vm1 = vmmov 1  }
   0xe   : > { %1407 = vset.pattern.permute.xlu0 %v1442_v2  ;;  %v423_v3 = vld [vmem:[%s1681_s3] sm:$0xff]  ;;  %v316_v11 = vld [vmem:[%s1678_s0 + $0x68] sm:$0xff]  ;;  %v313_v18 = vld [vmem:[%s1678_s0 + $0x50] sm:$0xff] }
   0xf   : > { %322 = vperm.xlu0 %1407, %v1408_v1   ;;  %v315_v10 = vld [vmem:[%s1678_s0 + $0x60] sm:$0xff]  ;;  %v314_v19 = vld [vmem:[%s1678_s0 + $0x58] sm:$0xff]  ;;  %v312_v24 = vld [vmem:[%s1678_s0 + $0x48] sm:$0xff] }
  0x10   : > { %v1522_v12 = vld [vmem:[%s1680_s2] ss:$0 sm:$0xff]  ;;  %v309_v28 = vld [vmem:[%s1678_s0 + $0x30] sm:$0xff]  ;;  %v310_v29 = vld [vmem:[%s1678_s0 + $0x38] sm:$0xff] }
  0x11   : > { %v311_v23 = vld [vmem:[%s1678_s0 + $0x40] sm:$0xff]  ;;  %v308_v34 = vld [vmem:[%s1678_s0 + $0x28] sm:$0xff]  ;;  %v305_v38 = vld [vmem:[%s1678_s0 + $0x10] sm:$0xff] }
  0x12   : > { %v307_v33 = vld [vmem:[%s1678_s0 + $0x20] sm:$0xff]  ;;  %v306_v39 = vld [vmem:[%s1678_s0 + $0x18] sm:$0xff]  ;;  %v304_v44 = vld [vmem:[%s1678_s0 + $0x8] sm:$0xff] }
  0x13   : > { %v303_v43 = vld [vmem:[%s1678_s0] sm:$0xff]  ;;  %v350_v49 = vld [vmem:[%s1679_s1 + $0x8] sm:$0xff]  ;;  %v351_v60 = vld [vmem:[%s1679_s1 + $0x10] sm:$0xff] }
  0x14   : > { %v349_v48 = vld [vmem:[%s1679_s1] sm:$0xff]  ;;  %v354_v51 = vld [vmem:[%s1679_s1 + $0x28] sm:$0xff]  ;;  %v352_v61 = vld [vmem:[%s1679_s1 + $0x18] sm:$0xff] }
  0x15   : > { %v353_v50 = vld [vmem:[%s1679_s1 + $0x20] sm:$0xff]  ;;  %v358_v53 = vld [vmem:[%s1679_s1 + $0x48] sm:$0xff]  ;;  %v365_v56 = vpack.c.bf16 %v350_v49, %v349_v48  ;;  %v355_v62 = vld [vmem:[%s1679_s1 + $0x30] sm:$0xff] }
  0x16   : > { %v357_v52 = vld [vmem:[%s1679_s1 + $0x40] sm:$0xff]  ;;  %v362_v55 = vld [vmem:[%s1679_s1 + $0x68] sm:$0xff]  ;;  %v367_v57 = vpack.c.bf16 %v354_v51, %v353_v50  ;;  %v356_v63 = vld [vmem:[%s1679_s1 + $0x38] sm:$0xff] }
  0x17   : > { %440 = vperm.xlu0 %1407, %v423_v3   ;;  %v361_v54 = vld [vmem:[%s1679_s1 + $0x60] sm:$0xff]  ;;  %v369_v58 = vpack.c.bf16 %v358_v53, %v357_v52  ;;  %v359_v0 = vld [vmem:[%s1679_s1 + $0x50] sm:$0xff]  ;;  %v360_v1 = vld [vmem:[%s1679_s1 + $0x58] sm:$0xff] }
  0x18   : > { %v371_v59 = vpack.c.bf16 %v362_v55, %v361_v54  ;;  %v363_v2 = vld [vmem:[%s1679_s1 + $0x70] sm:$0xff]  ;;  %v364_v3 = vld [vmem:[%s1679_s1 + $0x78] sm:$0xff] }
  0x81   : > { %v1509_v6 = vpop.permute.xlu0 %322 }
  0x82   : > { %v339_v7 = vmul.f32 %v1509_v6, %v317_v4  ;;  %v340_v8 = vmul.f32 %v1509_v6, %v318_v5  ;;  %v337_v13 = vmul.f32 %v1509_v6, %v315_v10  ;;  %v338_v14 = vmul.f32 %v1509_v6, %v316_v11 }
  0x83   : > { %v335_v20 = vmul.f32 %v1509_v6, %v313_v18  ;;  %v336_v21 = vmul.f32 %v1509_v6, %v314_v19  ;;  %v333_v25 = vmul.f32 %v1509_v6, %v311_v23  ;;  %v334_v26 = vmul.f32 %v1509_v6, %v312_v24 }
  0x84   : > { %v348_v9 = vpack.c.bf16 %v340_v8, %v339_v7  ;;  %v347_v17 = vpack.c.bf16 %v338_v14, %v337_v13  ;;  %v331_v30 = vmul.f32 %v1509_v6, %v309_v28  ;;  %v332_v31 = vmul.f32 %v1509_v6, %v310_v29 }
  0x85   : > { %v346_v22 = vpack.c.bf16 %v336_v21, %v335_v20  ;;  %v345_v27 = vpack.c.bf16 %v334_v26, %v333_v25  ;;  %v329_v35 = vmul.f32 %v1509_v6, %v307_v33  ;;  %v330_v36 = vmul.f32 %v1509_v6, %v308_v34 }
  0x86   : > { %373 = vmatpush.bf16.xpose.msra.mxu0 %v348_v9  ;;  %1354 = vmatpush.bf16.xpose.msra.mxu1 %v348_v9  ;;  %v344_v32 = vpack.c.bf16 %v332_v31, %v331_v30  ;;  %v327_v40 = vmul.f32 %v1509_v6, %v305_v38  ;;  %v328_v41 = vmul.f32 %v1509_v6, %v306_v39 }
  0x87   : > { %1355 = vmatpush.bf16.xpose.msra.mxu2 %v348_v9  ;;  %1356 = vmatpush.bf16.xpose.msra.mxu3 %v348_v9  ;;  %v343_v37 = vpack.c.bf16 %v330_v36, %v329_v35  ;;  %v325_v45 = vmul.f32 %v1509_v6, %v303_v43  ;;  %v326_v46 = vmul.f32 %v1509_v6, %v304_v44 }
  0x88   : > { %v342_v42 = vpack.c.bf16 %v328_v41, %v327_v40  ;;  %v366_v4 = vpack.c.bf16 %v352_v61, %v351_v60  ;;  %v368_v5 = vpack.c.bf16 %v356_v63, %v355_v62  ;;  %v370_v6 = vpack.c.bf16 %v360_v1, %v359_v0 }
  0x89   : > { %v1526_v15 = vpop.permute.xlu0 %440  ;;  %v341_v47 = vpack.c.bf16 %v326_v46, %v325_v45  ;;  %v372_v7 = vpack.c.bf16 %v364_v3, %v363_v2 }
  0x8a   : > { %vm488_vm0 = vcmp.eq.s32.totalorder %v1526_v15, %v1522_v12  ;;  %v1444_v12 = vmov (%p667_p4), 1e+30   ;;  %v1445_v15 = vmov (%p667_p4), -1e+30  }
  0x8b   : > { %vm1533_vm2 = vmxor %vm488_vm0, %vm1443_vm1  ;;  %673 = vst [vmem:[#allocation2] sm:$0x1] (%p667_p4), %v1444_v12 }
  0x8c   : > { %674 = vst [vmem:[#allocation3] sm:$0x1] (%p667_p4), %v1445_v15 }
  0x8e   : > { %374 = vmatpush.bf16.xpose.msra.mxu0 %v347_v17  ;;  %1357 = vmatpush.bf16.xpose.msra.mxu1 %v347_v17 }
  0x8f   : > { %1358 = vmatpush.bf16.xpose.msra.mxu2 %v347_v17  ;;  %1359 = vmatpush.bf16.xpose.msra.mxu3 %v347_v17 }
  0x96   : > { %375 = vmatpush.bf16.xpose.msra.mxu0 %v346_v22  ;;  %1360 = vmatpush.bf16.xpose.msra.mxu1 %v346_v22 }
  0x97   : > { %1361 = vmatpush.bf16.xpose.msra.mxu2 %v346_v22  ;;  %1362 = vmatpush.bf16.xpose.msra.mxu3 %v346_v22 }
  0x9e   : > { %376 = vmatpush.bf16.xpose.msra.mxu0 %v345_v27  ;;  %1363 = vmatpush.bf16.xpose.msra.mxu1 %v345_v27 }
  0x9f   : > { %1364 = vmatpush.bf16.xpose.msra.mxu2 %v345_v27  ;;  %1365 = vmatpush.bf16.xpose.msra.mxu3 %v345_v27 }
  0xa6   : > { %377 = vmatpush.bf16.xpose.msra.mxu0 %v344_v32  ;;  %1366 = vmatpush.bf16.xpose.msra.mxu1 %v344_v32 }
  0xa7   : > { %1367 = vmatpush.bf16.xpose.msra.mxu2 %v344_v32  ;;  %1368 = vmatpush.bf16.xpose.msra.mxu3 %v344_v32 }
  0xae   : > { %378 = vmatpush.bf16.xpose.msra.mxu0 %v343_v37  ;;  %1369 = vmatpush.bf16.xpose.msra.mxu1 %v343_v37 }
  0xaf   : > { %1370 = vmatpush.bf16.xpose.msra.mxu2 %v343_v37  ;;  %1371 = vmatpush.bf16.xpose.msra.mxu3 %v343_v37 }
  0xb6   : > { %379 = vmatpush.bf16.xpose.msra.mxu0 %v342_v42  ;;  %1372 = vmatpush.bf16.xpose.msra.mxu1 %v342_v42 }
  0xb7   : > { %1373 = vmatpush.bf16.xpose.msra.mxu2 %v342_v42  ;;  %1374 = vmatpush.bf16.xpose.msra.mxu3 %v342_v42 }
  0xbe   : > { %380 = vmatpush.bf16.xpose.msra.mxu0 %v341_v47  ;;  %1375 = vmatpush.bf16.xpose.msra.mxu1 %v341_v47 }
  0xbf   : > { %1376 = vmatpush.bf16.xpose.msra.mxu2 %v341_v47  ;;  %1377 = vmatpush.bf16.xpose.msra.mxu3 %v341_v47 }
  0xc5   : > { %381 = vmatmul.bf16.vlgmr.msra.gmra.mxu0 %v365_v56  ;;  %391 = vmatmul.bf16.vlgmr.msra.gmra.mxu1 %v367_v57 }
  0xc6   : > { %401 = vmatmul.bf16.vlgmr.msra.gmra.mxu2 %v369_v58  ;;  %411 = vmatmul.bf16.vlgmr.msra.gmra.mxu3 %v371_v59 }
  0xd5   : > { %386 = vmatmul.bf16.gmra.mxu0 %v366_v4  ;;  %396 = vmatmul.bf16.gmra.mxu1 %v368_v5 }
  0xd6   : > { %406 = vmatmul.bf16.gmra.mxu2 %v370_v6  ;;  %416 = vmatmul.bf16.gmra.mxu3 %v372_v7 }
 0x142   : > { %v1634_v8 = vpop.f32.mrf.mxu0  ;;  %v392_v9 = vpop.f32.mrf.mxu1 }
 0x143   : > { %vm603_vm3 = vcmp.lt.f32.partialorder %v1634_v8, 0.99999 }
 0x144   : > { %vm1640_vm4 = vmand %vm488_vm0, %vm603_vm3 }
 0x149   : > { %v402_v11 = vpop.f32.mrf.mxu2  ;;  %v412_v13 = vpop.f32.mrf.mxu3 }
 0x14a   : > { %v384_v14 = vpop.f32.mrf.mxu0  ;;  %v394_v17 = vpop.f32.mrf.mxu1 }
 0x151   : > { %v404_v18 = vpop.f32.mrf.mxu2  ;;  %v414_v19 = vpop.f32.mrf.mxu3 }
 0x152   : > { %v387_v20 = vpop.f32.mrf.mxu0  ;;  %v397_v21 = vpop.f32.mrf.mxu1 }
 0x159   : > { %v407_v22 = vpop.f32.mrf.mxu2  ;;  %v417_v23 = vpop.f32.mrf.mxu3 }
 0x15a   : > { %v389_v24 = vpop.f32.mrf.mxu0  ;;  %v399_v25 = vpop.f32.mrf.mxu1 }
 0x15d   : > { %672 = sbr.rel (!%p667_p4) target bundleno = 354 (0x162), region = 44 }
 0x161   : > { %v409_v26 = vpop.f32.mrf.mxu2  ;;  %v419_v27 = vpop.f32.mrf.mxu3 }
 0x162 PF: > { %p1329_p5 = scmp.ne.s32.totalorder %s1432_s20, 0 }
 0x164   : > { %677 = sbr.rel (%p1329_p5) target bundleno = 388 (0x184), region = 48 }
 0x169   : > { %v678_v28 = vsel %vm1640_vm4, %v1634_v8, 1e+30  ;;  %v715_v29 = vsel %vm1533_vm2, %v1634_v8, -1e+30  ;;  %v752_v50 = vld [vmem:[#allocation2] sm:$0x1] }
 0x16a   : > { %v694_v30 = vmin.f32 %v678_v28, 1e+30  ;;  %v731_v31 = vmax.f32 %v715_v29, -1e+30  ;;  %v755_v51 = vld [vmem:[#allocation3] sm:$0x1] }
 0x16c   : > { %v698_v32 = vmin.f32 %v694_v30, 1e+30  ;;  %v735_v33 = vmax.f32 %v731_v31, -1e+30 }
 0x16e   : > { %v702_v34 = vmin.f32 %v698_v32, 1e+30  ;;  %v739_v35 = vmax.f32 %v735_v33, -1e+30 }
 0x170   : > { %v706_v36 = vmin.f32 %v702_v34, 1e+30  ;;  %v743_v37 = vmax.f32 %v739_v35, -1e+30 }
 0x172   : > { %v708_v38 = vmin.f32 %v706_v36, 1e+30  ;;  %v745_v39 = vmax.f32 %v743_v37, -1e+30 }
 0x174   : > { %v709_v40 = vrot.slane %v708_v38, 4  ;;  %v746_v41 = vrot.slane %v745_v39, 4 }
 0x176   : > { %v710_v42 = vmin.f32 %v708_v38, %v709_v40  ;;  %v747_v43 = vmax.f32 %v745_v39, %v746_v41 }
 0x178   : > { %v711_v44 = vrot.slane %v710_v42, 2  ;;  %v748_v45 = vrot.slane %v747_v43, 2 }
 0x17a   : > { %v712_v46 = vmin.f32 %v710_v42, %v711_v44  ;;  %v749_v47 = vmax.f32 %v747_v43, %v748_v45 }
 0x17c   : > { %v713_v48 = vrot.slane %v712_v46, 1  ;;  %v750_v49 = vrot.slane %v749_v47, 1 }
 0x17e   : > { %v714_v52 = vmin.f32 %v712_v46, %v713_v48  ;;  %v751_v53 = vmax.f32 %v749_v47, %v750_v49 }
 0x180   : > { %v753_v54 = vmin.f32 %v752_v50, %v714_v52  ;;  %v756_v55 = vmax.f32 %v755_v51, %v751_v53 }
 0x182   : > { %754 = vst [vmem:[#allocation2] sm:$0x1] %v753_v54 }
 0x183   : > { %757 = vst [vmem:[#allocation3] sm:$0x1] %v756_v55 }
 0x184 PF: > { %p758_p6 = scmp.eq.s32.totalorder %s1432_s20, 1 }
 0x185   : > { %v1446_v56 = vmov (%p758_p6), 0.0  }
 0x186   : > { %762 = sbr.rel (!%p758_p6) target bundleno = 395 (0x18b), region = 52  ;;  %763 = vst [vmem:[#allocation4] sm:$0x1] (%p758_p6), %v1446_v56 }
 0x187   : > { %764 = vst [vmem:[#allocation5] sm:$0x1] (%p758_p6), %v1446_v56 }
 0x18b PF: > { %p1331_p7 = scmp.ne.s32.totalorder %s1432_s20, 1 }
 0x18d   : > { %767 = sbr.rel (%p1331_p7) target bundleno = 444 (0x1bc), region = 56 }
 0x192   : > { %v1333_v57 = vadd.f32 -0.5, %v1634_v8  ;;  %v769_v62 = vld [vmem:[#allocation3] sm:$0x1]  ;;  %v768_v1 = vld [vmem:[#allocation2] sm:$0x1] }
 0x193   : > { %v806_v4 = vadd.f32 0.1, %v769_v62  ;;  %v1332_v6 = vadd.f32 -0.1, %v768_v1  ;;  %v1114_v29 = vld [vmem:[#allocation4] sm:$0x1] }
 0x194   : > { %v858_v58 = vpack.c.bf16 %v1333_v57, %v1333_v57  ;;  %v1154_v31 = vld [vmem:[#allocation5] sm:$0x1] }
 0x195   : > { %v808_v9 = vperm.slane %v806_v4, 0  ;;  %v772_v11 = vperm.slane %v1332_v6, 0 }
 0x196   : > { %v874_v59 = vunpack.c.l.bf16 %v858_v58 }
 0x197   : > { %vm810_vm5 = vcmp.lt.f32.partialorder %v1634_v8, %v808_v9  ;;  %vm774_vm6 = vcmp.gt.f32.partialorder %v1634_v8, %v772_v11 }
 0x198   : > { %v890_v60 = vmul.f32 -2.0, %v874_v59  ;;  %v1002_v61 = vmul.f32 40.0, %v874_v59  ;;  %vm826_vm7 = vmand %vm1640_vm4, %vm810_vm5 }
 0x199   : > { %vm790_vm8 = vmand %vm1533_vm2, %vm774_vm6 }
 0x19a   : > { %v906_v63 = vpack.c.bf16 %v890_v60, %v890_v60  ;;  %v1018_v0 = vpack.c.bf16 %v1002_v61, %v1002_v61 }
 0x19c   : > { %v922_v2 = vunpack.c.l.bf16 %v906_v63  ;;  %v1034_v3 = vunpack.c.l.bf16 %v1018_v0 }
 0x19e   : > { %v938_v5 = vmul.f32 1.442695, %v922_v2  ;;  %v1050_v7 = vmul.f32 1.442695, %v1034_v3 }
 0x1a0   : > { %1410 = vpow2.f32 %v938_v5 }
 0x1a1   : > { %1412 = vpow2.f32 %v1050_v7 }
 0x1a6   : > { %v1411_v13 = vpop.eup %1410 }
 0x1a7   : > { %v1413_v14 = vpop.eup %1412  ;;  %v970_v17 = vpack.c.bf16 %v1411_v13, %v1411_v13 }
 0x1a8   : > { %v1082_v18 = vpack.c.bf16 %v1413_v14, %v1413_v14 }
 0x1a9   : > { %v986_v19 = vunpack.c.l.bf16 %v970_v17 }
 0x1aa   : > { %v1098_v20 = vunpack.c.l.bf16 %v1082_v18 }
 0x1ab   : > { %v1115_v21 = vsel %vm826_vm7, %v986_v19, 0.0 }
 0x1ac   : > { %v1146_v22 = vrot.slane %v1115_v21, 4  ;;  %v1155_v23 = vsel %vm790_vm8, %v1098_v20, 0.0 }
 0x1ad   : > { %v1186_v24 = vrot.slane %v1155_v23, 4 }
 0x1ae   : > { %v1147_v25 = vadd.f32 %v1146_v22, %v1115_v21 }
 0x1af   : > { %v1187_v26 = vadd.f32 %v1186_v24, %v1155_v23 }
 0x1b0   : > { %v1148_v27 = vrot.slane %v1147_v25, 2 }
 0x1b1   : > { %v1188_v12 = vrot.slane %v1187_v26, 2 }
 0x1b2   : > { %v1149_v8 = vadd.f32 %v1148_v27, %v1147_v25 }
 0x1b3   : > { %v1189_v15 = vadd.f32 %v1188_v12, %v1187_v26 }
 0x1b4   : > { %v1150_v28 = vrot.slane %v1149_v8, 1 }
 0x1b5   : > { %v1190_v10 = vrot.slane %v1189_v15, 1 }
 0x1b6   : > { %v1151_v30 = vadd.f32 %v1150_v28, %v1149_v8 }
 0x1b7   : > { %v1191_v32 = vadd.f32 %v1190_v10, %v1189_v15 }
 0x1b8   : > { %v1152_v33 = vadd.f32 %v1151_v30, %v1114_v29 }
 0x1b9   : > { %v1192_v16 = vadd.f32 %v1191_v32, %v1154_v31 }
 0x1ba   : > { %1153 = vst [vmem:[#allocation4] sm:$0x1] %v1152_v33 }
 0x1bb   : > { %1193 = vst [vmem:[#allocation5] sm:$0x1] %v1192_v16 }
 0x1bc PF: > { %1195 = sbr.rel (!%p758_p6) target bundleno = 468 (0x1d4), region = 60  ;;  %v1200_v38 = vlaneseq (%p758_p6)  ;;  %v1197_v39 = vld [vmem:[#allocation3] sm:$0x1] (%p758_p6)  ;;  %v1196_v42 = vld [vmem:[#allocation2] sm:$0x1] (%p758_p6) }
 0x1bd   : > { %v1198_v40 = vadd.f32 (%p758_p6), 0.1, %v1197_v39 }
 0x1be   : > { %v1201_v41 = vand.u32 (%p758_p6), 127, %v1200_v38 }
 0x1bf   : > { %vm1199_vm9 = vcmp.lt.f32.partialorder (%p758_p6), %v1196_v42, %v1198_v40 }
 0x1c0   : > { %vm1205_vm10 = vcmp.lt.s32.totalorder (%p758_p6), %v1201_v41, 8 }
 0x1c1   : > { %v1207_v34 = vld [vmem:[#allocation4] sm:$0x1]  ;;  %vm1206_vm11 = vmand %vm1199_vm9, %vm1205_vm10 }
 0x1c2   : > { %v1208_v35 = vadd.f32 1.0, %v1207_v34  ;;  %v1212_v36 = vld [vmem:[#allocation5] sm:$0x1] }
 0x1c3   : > { %v1213_v37 = vadd.f32 1.0, %v1212_v36 }
 0x1c4   : > { %1414 = vlog2.f32 %v1208_v35 }
 0x1c5   : > { %1416 = vlog2.f32 %v1213_v37 }
 0x1ca   : > { %v1415_v43 = vpop.eup %1414 }
 0x1cb   : > { %v1417_v44 = vpop.eup %1416  ;;  %v1210_v45 = vmul.f32 0.6931472, %v1415_v43 }
 0x1cc   : > { %v1215_v46 = vmul.f32 0.6931472, %v1417_v44 }
 0x1cd   : > { %v1211_v47 = vmul.f32 0.5, %v1210_v45 }
 0x1ce   : > { %v1216_v48 = vmul.f32 0.025, %v1215_v46 }
 0x1d0   : > { %v1217_v49 = vadd.f32 %v1216_v48, %v1211_v47 }
 0x1d2   : > { %v1218_v50 = vsel %vm1206_vm11, %v1217_v49, 0.0 }
 0x1d3   : > { %1219 = vst [vmem:[%s1683_s5] sm:$0x1] %v1218_v50 }
 0x1d4 PF: > { %s17_s22 = sadd.s32 1, %s1440_s22   ;;  %s1688_s20 = smov %s1436_s21 }
 0x1d5   : > { %p14_p8 = scmp.ge.s32.totalorder %s17_s22, 4   ;;  %s1689_s21 = smov %s1691_s4 }
 0x1d7   :  { %16 = sbr.rel (!%p14_p8) target bundleno = 3 (0x3), region = 99 }

</bundles_post_ra>
